<compile_context>
chip_gen: v7x
topology: tpu7x:2x2x1
jax: 0.10.0
libtpu: 0.0.40
codegen_flags: <defaults>
</compile_context>

<pallas_src>
from functools import lru_cache, partial

import numpy as np
import jax
import jax.numpy as jnp
from jax.experimental import pallas as pl
from jax.experimental.pallas import tpu as pltpu


_ASSUMED_TENSORCORES = 2      # v7x has 2 TCs; extra steps are harmless pipelining on v5e/v6e.
_TARGET_STEPS_PER_CORE = 4    # >= 3-4 steps/core so the pipeline reaches steady state.
_MIN_TILE_N = 256             # amortize ~0.35 us per-step overhead.
_MAX_TILE_N = 1024            # 512-1024 rows already ~85% of HBM roofline; bigger buys nothing.
_PALLAS_MIN_ELEMS = 1 << 16   # below this, launch overhead dominates -> plain XLA path.


def _round_up(x: int, m: int) -> int:
    return ((x + m - 1) // m) * m


def _sublane(dtype) -> int:
    # f32 -> 8, bf16 -> 16, int8/fp8 -> 32 (packed dtypes pack along sublanes).
    return max(8, 32 // jnp.dtype(dtype).itemsize)


def _pick_tile_n(n: int, sublane: int) -> int:
    """Batch-tile rows: guarantee >= 2 blocks (TC sharding + pipelining) for
    non-trivial batches, ~_TARGET_STEPS_PER_CORE steps per core for big ones."""
    if n <= _MIN_TILE_N:
        return n  # single full-dim block; launch overhead dominates here anyway
    target = _round_up(
        pl.cdiv(n, _ASSUMED_TENSORCORES * _TARGET_STEPS_PER_CORE), sublane
    )
    tile_n = max(_MIN_TILE_N, min(_MAX_TILE_N, target))
    # Never collapse to a single unpipelined block: cap at ceil(n/2) rows.
    tile_n = min(tile_n, _round_up(pl.cdiv(n, 2), sublane))
    return min(tile_n, n)


@lru_cache(maxsize=None)
def _pool_matrix_np(length: int, voter_num: int) -> np.ndarray:
    """0/1 selection matrix: P[i, j] = 1 iff j == i // voter_num (exact in bf16)."""
    c = length // voter_num
    rows = np.arange(length)
    cols = np.arange(c)
    return ((rows[:, None] // voter_num) == cols[None, :]).astype(np.float32)


def _voting_kernel(x_ref, p_ref, o_ref, *, inv_voter: float):
    # x_ref: (tile_n, L) native dtype; p_ref: (L, C) 0/1 matrix, same dtype.
    # The MXU runs the native-dtype matmul with f32 accumulation; the
    # 1/voter_num scale is one f32 multiply on the small (tile_n, C) result.
    acc = jnp.dot(x_ref[...], p_ref[...], preferred_element_type=jnp.float32)
    o_ref[...] = (acc * inv_voter).astype(o_ref.dtype)


@partial(jax.jit, static_argnums=(1,))
def voting_layer_pallas(x: jax.Array, voter_num: int) -> jax.Array:
    """AvgPool1d(voter_num, voter_num) along the last axis of 2-D x (Pallas path)."""
    n, length = x.shape
    assert length % voter_num == 0, "L must be divisible by voter_num"
    c = length // voter_num
    itemsize = jnp.dtype(x.dtype).itemsize

    # 0/1 pool matrix in the input dtype (exact values); constant-folded under jit.
    pool = jnp.asarray(_pool_matrix_np(length, voter_num), dtype=x.dtype)

    tile_n = _pick_tile_n(n, _sublane(x.dtype))
    grid = (pl.cdiv(n, tile_n),)

    cost = pl.CostEstimate(
        flops=2 * n * length * c,
        transcendentals=0,
        bytes_accessed=(n * length + n * c + length * c) * itemsize,
    )

    return pl.pallas_call(
        partial(_voting_kernel, inv_voter=1.0 / float(voter_num)),
        out_shape=jax.ShapeDtypeStruct((n, c), x.dtype),
        grid=grid,
        in_specs=[
            pl.BlockSpec((tile_n, length), lambda i: (i, 0)),
            # Tiny constant pool matrix: same block every step -> VMEM resident.
            pl.BlockSpec((length, c), lambda i: (0, 0)),
        ],
        out_specs=pl.BlockSpec((tile_n, c), lambda i: (i, 0)),
        compiler_params=pltpu.CompilerParams(
            # Independent batch tiles -> shard across TensorCores (2x on v7x).
            dimension_semantics=("parallel",),
        ),
        cost_estimate=cost,
    )(x, pool)


@partial(jax.jit, static_argnums=(1,))
def voting_layer(x: jax.Array, voter_num: int) -> jax.Array:
    """Public entry point: tiny problems go to plain XLA (kernel launch
    overhead dominates there); larger batches take the Pallas kernel."""
    n, length = x.shape
    assert length % voter_num == 0, "L must be divisible by voter_num"
    if n * length < _PALLAS_MIN_ELEMS:
        c = length // voter_num
        acc = x.reshape(n, c, voter_num).astype(jnp.float32).sum(axis=-1)
        return (acc * (1.0 / float(voter_num))).astype(x.dtype)
    return voting_layer_pallas(x, voter_num)


if __name__ == "__main__":
    key = jax.random.PRNGKey(0)
    # Typical SpikingJelly usage: 10 classes, 10 voters per class -> L = 100.
    num_classes, voter_num = 10, 10
    length = num_classes * voter_num

    def ref_voting(x):
        xf = x.astype(jnp.float32).reshape(x.shape[0], num_classes, voter_num)
        return xf.mean(axis=-1)

    # 1) Typical small batch, f32: single full-dim block.
    x_small = jax.random.normal(key, (8, length), dtype=jnp.float32)
    out_small = jax.block_until_ready(voting_layer_pallas(x_small, voter_num))
    assert out_small.shape == (8, num_classes) and out_small.dtype == x_small.dtype
    assert jnp.allclose(out_small, ref_voting(x_small), atol=1e-5, rtol=1e-5)

    # 2) Larger batch exercising the tiled/pipelined path (>= 2 grid steps,
    #    partial last block), f32.
    x_big = jax.random.normal(
        jax.random.fold_in(key, 1), (600, length), dtype=jnp.float32
    )
    out_big = jax.block_until_ready(voting_layer_pallas(x_big, voter_num))
    assert out_big.shape == (600, num_classes)
    assert jnp.allclose(out_big, ref_voting(x_big), atol=1e-5, rtol=1e-5)

    # 3) Native bf16 spikes: 0/1 pool matrix is exact in bf16, f32 accumulation.
    x_bf16 = x_big.astype(jnp.bfloat16)
    out_bf16 = jax.block_until_ready(voting_layer_pallas(x_bf16, voter_num))
    assert out_bf16.shape == (600, num_classes) and out_bf16.dtype == jnp.bfloat16
    assert jnp.allclose(
        out_bf16.astype(jnp.float32), ref_voting(x_bf16), atol=2e-2, rtol=2e-2
    )

    # 4) Dispatcher sanity: tiny problem takes the XLA path, same numbers.
    out_disp = jax.block_until_ready(voting_layer(x_small, voter_num))
    assert jnp.allclose(out_disp, out_small, atol=1e-5, rtol=1e-5)

    print("KERNEL_OK")
</pallas_src>

<mosaic_0001>
module attributes {stable_mosaic.version = 11 : i64} {
  func.func @_voting_kernel(%arg0: i32, %arg1: memref<8x100xf32, #tpu.memory_space<vmem>>, %arg2: memref<100x10xf32, #tpu.memory_space<vmem>>, %arg3: memref<8x10xf32, #tpu.memory_space<vmem>>) attributes {dimension_semantics = [#tpu.dimension_semantics<parallel>], iteration_bounds = array<i64: 1>, scalar_prefetch = 0 : i64, scratch_operands = 0 : i64, tpu.core_type = #tpu.core_type<tc>, window_params = [{transform_indices = @transform_0, window_bounds = array<i64: 8, 100>}, {pipeline_mode = #tpu.pipeline_mode<synchronous>, transform_indices = @transform_1, window_bounds = array<i64: 100, 10>}, {transform_indices = @transform_2, window_bounds = array<i64: 8, 10>}]} {
    %c0 = arith.constant 0 : index
    %c0_0 = arith.constant 0 : index
    %0 = vector.load %arg1[%c0, %c0_0] : memref<8x100xf32, #tpu.memory_space<vmem>>, vector<8x100xf32>
    %c0_1 = arith.constant 0 : index
    %c0_2 = arith.constant 0 : index
    %1 = vector.load %arg2[%c0_1, %c0_2] : memref<100x10xf32, #tpu.memory_space<vmem>>, vector<100x10xf32>
    %cst = arith.constant dense<0.000000e+00> : vector<8x10xf32>
    %2 = tpu.matmul %0, %1, %cst {dimension_numbers = #tpu.dot_dimension_numbers<[1], [0], [0], [1], [0, 0, 1, 1], [], []>} : vector<8x100xf32>, vector<100x10xf32>, vector<8x10xf32> -> vector<8x10xf32>
    %cst_3 = arith.constant 1.000000e-01 : f32
    %3 = vector.broadcast %cst_3 : f32 to vector<8x10xf32>
    %4 = arith.mulf %2, %3 : vector<8x10xf32>
    %c0_4 = arith.constant 0 : index
    %c0_5 = arith.constant 0 : index
    %5 = vector.load %arg3[%c0_4, %c0_5] : memref<8x10xf32, #tpu.memory_space<vmem>>, vector<8x10xf32>
    tpu.vector_store %arg3[%c0_4, %c0_5], %4 {strides = array<i32>} : memref<8x10xf32, #tpu.memory_space<vmem>>, vector<8x10xf32>,
    return
  }
  func.func @transform_0(%arg0: i32) -> (i32, i32) {
    %c0_i32 = arith.constant 0 : i32
    %c0_i32_0 = arith.constant 0 : i32
    return %arg0, %c0_i32 : i32, i32
  }
  func.func @transform_1(%arg0: i32) -> (i32, i32) {
    %c0_i32 = arith.constant 0 : i32
    %c0_i32_0 = arith.constant 0 : i32
    %c0_i32_1 = arith.constant 0 : i32
    return %c0_i32, %c0_i32_0 : i32, i32
  }
  func.func @transform_2(%arg0: i32) -> (i32, i32) {
    %c0_i32 = arith.constant 0 : i32
    %c0_i32_0 = arith.constant 0 : i32
    return %arg0, %c0_i32 : i32, i32
  }
}

</mosaic_0001>

<bundles_post_ra>
// kernel: voting_layer_pallas.1
= control target key start
LH: loop header
LB: loop body
LE: loop exit
PB: predicated region body
PF: predicated region fallthrough
CT: control target
= control target key end

     0   :  { %7 = vsyncpa [#allocation3], 0  ;;  %s358_s0 = inlined_call_operand.hbm [shape: f32[8,100], index: 0, kind: input, shape index: {}]   ;;  %s359_s1 = inlined_call_operand.hbm [shape: f32[100,10], index: 1, kind: input, shape index: {}]   ;;  %s360_s2 = inlined_call_operand.hbm [shape: f32[8,10], index: 2, kind: output, shape index: {}]  }
   0x1   :  { %8 = vsyncpa [#allocation6], 0 }
   0x2   :  { %9 = vsyncpa [#allocation4], 0  ;;  %s292_s9 = smov [#allocation2]   ;;  %s293_s11 = smov [#allocation5]  }
   0x3   :  { %s16_s10 = sshll.u32 %s292_s9, 4  ;;  %s25_s12 = sshll.u32 %s293_s11, 4  ;;  %s17_s10 = int_to_ptr.vmem [resolvable:$true] %s16_s10  ;;  %s315_s12 = int_to_ptr.vmem [resolvable:$true] %s25_s12 }
   0x4   :  { %s220_s15 = scalar_lea.hbm %s358_s0, 128 }
   0x5   :  { %p221_p0 = scmp.ne.s32.totalorder %s358_s0, %s220_s15  ;;  %p224_p1 = scmp.lt.u32.totalorder %s220_s15, %s358_s0 }
   0x7   :  { %p226_p2 = pnand %p224_p1, %p221_p0 }
   0x9   :  { %229 = shalt.err (!%p226_p2)
}
   0xa   :  { %s230_s20 = scalar_lea.vmem %s17_s10, 128  ;;  %p235_p4 = scmp.lt.s32.totalorder %s17_s10, %s17_s10 }
   0xb   :  { %p231_p3 = scmp.ne.s32.totalorder %s17_s10, %s230_s20  ;;  %p236_p5 = scmp.lt.s32.totalorder %s230_s20, %s230_s20 }
   0xd   :  { %p237_p6 = por %p236_p5, %p235_p4 }
   0xf   :  { %p238_p7 = pnand %p237_p6, %p231_p3 }
  0x11   :  { %241 = shalt.err (!%p238_p7)
}
  0x12   :  { %19 = dma.hbm_to_vmem [thread:$0]  %s358_s0, 128, %s17_s10, [#allocation3]  }
  0x13   :  { %s242_s25 = scalar_lea.hbm %s359_s1, 1664 }
  0x14   :  { %p243_p8 = scmp.ne.s32.totalorder %s359_s1, %s242_s25  ;;  %p246_p9 = scmp.lt.u32.totalorder %s242_s25, %s359_s1 }
  0x16   :  { %p248_p10 = pnand %p246_p9, %p243_p8 }
  0x18   :  { %251 = shalt.err (!%p248_p10)
}
  0x19   :  { %s252_s30 = scalar_lea.vmem %s315_s12, 1664  ;;  %p257_p12 = scmp.lt.s32.totalorder %s315_s12, %s315_s12 }
  0x1a   :  { %p253_p11 = scmp.ne.s32.totalorder %s315_s12, %s252_s30  ;;  %p258_p13 = scmp.lt.s32.totalorder %s252_s30, %s252_s30 }
  0x1c   :  { %p259_p0 = por %p258_p13, %p257_p12 }
  0x1e   :  { %p260_p1 = pnand %p259_p0, %p253_p11 }
  0x20   :  { %263 = shalt.err (!%p260_p1)
}
  0x21   :  { %s294_s0 = smov 128   ;;  %s295_s3 = smov 8  }
  0x22   :  { %31 = dma.hbm_to_vmem [thread:$0]  %s359_s1, 1664, %s315_s12, [#allocation6], %s294_s0, %s294_s0, %s295_s3  }
  0x23   :  { %286 = dma.done.wait [#allocation3], 128  }
  0x24   :  { %287 = vsyncadd [#allocation3], 4294967168 }
  0x25   :  { %288 = dma.done.wait [#allocation6], 1664  }
  0x26   :  { %289 = vsyncadd [#allocation6], 4294965632  ;;  %v296_v0 = vmov 0.0|0.0   ;;  %vm297_vm0 = vmmov 0   ;;  %v298_v1 = vmov 0.0   ;;  %v39_v2 = vld [vmem:[#allocation5] sm:$0xff] }
  0x27   :  { %194 = vmatprep.subr.bf16.mxu0 %v296_v0  ;;  %191 = vmatprep.mubr.msk.f32.mxu0 %vm297_vm0, %v298_v1  ;;  %v40_v3 = vld [vmem:[#allocation5 + $0x8] sm:$0xff]  ;;  %v41_v4 = vld [vmem:[#allocation5 + $0x10] sm:$0xff]  ;;  %v42_v6 = vld [vmem:[#allocation5 + $0x18] sm:$0xff]  ;;  %vm56_vm1 = vcmask 1043456   ;;  %vm52_vm2 = vcmask 818176   ;;  %s299_s1 = smov [#allocation7]  }
  0x28   :  { %v195_v5 = vpack.c.bf16 %v40_v3, %v39_v2  ;;  %v198_v7 = vpack.c.bf16 %v42_v6, %v41_v4  ;;  %v43_v8 = vld [vmem:[#allocation5 + $0x20] sm:$0xff]  ;;  %v44_v9 = vld [vmem:[#allocation5 + $0x28] sm:$0xff]  ;;  %v45_v11 = vld [vmem:[#allocation5 + $0x30] sm:$0xff]  ;;  %s139_s6 = sshll.u32 %s299_s1, 4  ;;  %vm131_vm3 = vcmask 80896   ;;  %s140_s6 = int_to_ptr.vmem [resolvable:$true] %s139_s6 }
  0x29   :  { %v201_v10 = vpack.c.bf16 %v44_v9, %v43_v8  ;;  %v46_v12 = vld [vmem:[#allocation5 + $0x38] sm:$0xff]  ;;  %v47_v14 = vld [vmem:[#allocation5 + $0x40] sm:$0xff]  ;;  %v48_v15 = vld [vmem:[#allocation5 + $0x48] sm:$0xff]  ;;  %s264_s7 = scalar_lea.vmem %s140_s6, 128  ;;  %p269_p3 = scmp.lt.s32.totalorder %s140_s6, %s140_s6 }
  0x2a   :  { %196 = vmatpush3.bf16.msra.mxu0 %v195_v5  ;;  %v204_v13 = vpack.c.bf16 %v46_v12, %v45_v11  ;;  %v207_v16 = vpack.c.bf16 %v48_v15, %v47_v14  ;;  %v49_v17 = vld [vmem:[#allocation5 + $0x50] sm:$0xff]  ;;  %v50_v18 = vld [vmem:[#allocation5 + $0x58] sm:$0xff]  ;;  %v51_v20 = vld [vmem:[#allocation5 + $0x60] sm:$0xf]  ;;  %p265_p2 = scmp.ne.s32.totalorder %s140_s6, %s264_s7  ;;  %p270_p4 = scmp.lt.s32.totalorder %s264_s7, %s264_s7 }
  0x2b   :  { %197 = vmatprep.subr.bf16.mxu0 %v296_v0  ;;  %v210_v19 = vpack.c.bf16 %v50_v18, %v49_v17  ;;  %v38_v21 = vld [vmem:[#allocation2] sm:$0xff] }
  0x2c   :  { %p271_p5 = por %p270_p4, %p269_p3 }
  0x2e   :  { %199 = vmatpush3.bf16.msra.mxu0 %v198_v7  ;;  %p272_p6 = pnand %p271_p5, %p265_p2 }
  0x2f   :  { %200 = vmatprep.subr.bf16.mxu0 %v296_v0 }
  0x32   :  { %202 = vmatpush3.bf16.msra.mxu0 %v201_v10 }
  0x33   :  { %203 = vmatprep.subr.bf16.mxu0 %v296_v0 }
  0x36   :  { %205 = vmatpush3.bf16.msra.mxu0 %v204_v13 }
  0x37   :  { %206 = vmatprep.subr.bf16.mxu0 %v296_v0 }
  0x3a   :  { %208 = vmatpush3.bf16.msra.mxu0 %v207_v16 }
  0x3b   :  { %209 = vmatprep.subr.bf16.mxu0 %v296_v0 }
  0x3e   :  { %211 = vmatpush3.bf16.msra.mxu0 %v210_v19 }
  0x3f   :  { %189 = vmatprep.subr.mxu0 %v298_v1 }
  0x42   :  { %190 = vmatpush3.msk.msra.mxu0 %vm56_vm1, %v51_v20 }
  0x43   :  { %192 = vmatmul.mubr.msk.f32.vlgmr.msra.gmra.mrb[0].mxu0 %vm52_vm2, %v38_v21 }
 0x116   :  { %v126_v22 = vpop.f32.mrb[0].mxu0 }
 0x117   :  { %v130_v23 = vmul.f32 0.1, %v126_v22  ;;  %v193_v24 = vpop.f32.mrb[1].mxu0 }
 0x119   :  { %132 = vst.msk [vmem:[#allocation7] sm:$0xff] %vm131_vm3, %v130_v23 }
 0x11a   :  { %275 = shalt.err (!%p272_p6)
}
 0x11b   :  { %s276_s10 = scalar_lea.hbm %s360_s2, 128 }
 0x11c   :  { %p277_p7 = scmp.ne.s32.totalorder %s360_s2, %s276_s10  ;;  %p280_p8 = scmp.lt.u32.totalorder %s276_s10, %s360_s2 }
 0x11e   :  { %p282_p9 = pnand %p280_p8, %p277_p7 }
 0x120   :  { %285 = shalt.err (!%p282_p9)
}
 0x121   :  { %142 = dma.vmem_to_hbm [thread:$0]  %s140_s6, 128, %s360_s2, [#allocation4]  }
 0x122   :  { %290 = dma.done.wait [#allocation4], 128  }
 0x123   :  { %291 = vsyncadd [#allocation4], 4294967168 }
 0x124   :  { %146 = vsyncpa [#allocation3], 1 }
 0x125   :  { %147 = vsyncpa [#allocation6], 1 }
 0x126   :  { %148 = vsyncpa [#allocation4], 1 }

</bundles_post_ra>
